<compile_context>
chip_gen: v7x
topology: tpu7x:2x2x1
jax: 0.10.0
libtpu: 0.0.40
codegen_flags: <defaults>
</compile_context>

<pallas_src>
import functools

import jax
import jax.numpy as jnp
from jax import lax
from jax.experimental import pallas as pl
from jax.experimental.pallas import tpu as pltpu


# ----------------------------------------------------------------------------
# Fused kernel: 3x3 conv (im2col matmul) + bias + InstanceNorm partial stats.
# One (batch, row-tile) per grid step.
# ----------------------------------------------------------------------------
def _conv3x3_stats_kernel(x_ref, w_ref, b_ref, y_ref, s_ref, *, tile_h):
    # x_ref: (1, H+2, W+2, Cin)   bf16, zero-padded image, resident per n
    # w_ref: (9*Cin, Cout)        bf16, K order = (dy, dx, ci)
    # b_ref: (1, Cout)            f32
    # y_ref: (1, tile_h, W, Cout) f32  conv output rows for this tile
    # s_ref: (1, 1, 2, Cout)      f32  per-tile [sum, sum_sq] per conv channel
    t = pl.program_id(1)
    th = tile_h
    W = y_ref.shape[2]
    cout = y_ref.shape[3]
    cin = x_ref.shape[3]

    row0 = pl.multiple_of(t * th, th)
    # Halo rows come for free: padded image row (row0 + dy) == original row
    # (row0 - 1 + dy). Input block is full-image and stays resident across t.
    xp = x_ref[0, pl.ds(row0, th + 2), :, :]                 # (th+2, W+2, cin) bf16

    # im2col slab built once per tile (single materialization), then ONE MXU
    # matmul with K = 9*Cin instead of 9 tiny K=Cin matmuls.
    cols = [xp[dy:dy + th, dx:dx + W, :] for dy in range(3) for dx in range(3)]
    patch = jnp.concatenate(cols, axis=-1).reshape(th * W, 9 * cin)  # bf16

    acc = jnp.dot(patch, w_ref[...], preferred_element_type=jnp.float32)
    acc = acc + b_ref[...]                                   # (th*W, cout) f32

    y_ref[0] = acc.reshape(th, W, cout)                      # lane dim = Cout
    # (For realistic configs Cout = c_out*r^2 >= 128, i.e. lane-dense stores.)

    # InstanceNorm partial statistics (reduced across tiles / channel groups
    # outside on a tiny (N, HT, 2, Cout) tensor).
    s1 = jnp.sum(acc, axis=0, keepdims=True)                 # (1, cout)
    s2 = jnp.sum(acc * acc, axis=0, keepdims=True)           # (1, cout)
    s_ref[0, 0] = jnp.concatenate([s1, s2], axis=0)          # (2, cout)


# ----------------------------------------------------------------------------
# Wrapper
# ----------------------------------------------------------------------------
def upsample_block_forward(x_nchw, w_oihw, bias, upscale_factor, *, eps=1e-5):
    """UpsampleBlock.forward. x_nchw: (N, Cin, H, W) float32 -> (N, c_out, H*r, W*r)."""
    N, Cin, H, W = x_nchw.shape
    Cout = w_oihw.shape[0]
    r = int(upscale_factor)
    c_out = Cout // (r * r)
    Hr, Wr = H * r, W * r

    tile_h = 8 if H % 8 == 0 else H        # row tile (multiple of 8 when possible)
    HT = H // tile_h

    # ---- layout prep on the (small) input: cast->transpose->pad is one fused
    #      XLA copy; no separate HBM pad pass. ----
    x_nhwc = jnp.transpose(x_nchw.astype(jnp.bfloat16), (0, 2, 3, 1))
    xp = jnp.pad(x_nhwc, ((0, 0), (1, 1), (1, 1), (0, 0)))          # (N, H+2, W+2, Cin)
    # weights OIHW -> (9*Cin, Cout), K order (dy, dx, ci) matching the im2col slab
    w_mat = jnp.transpose(w_oihw, (2, 3, 1, 0)).reshape(9 * Cin, Cout)
    w_mat = w_mat.astype(jnp.bfloat16)
    b2 = bias.reshape(1, Cout).astype(jnp.float32)

    kernel = functools.partial(_conv3x3_stats_kernel, tile_h=tile_h)
    conv_out, stats = pl.pallas_call(
        kernel,
        out_shape=(
            jax.ShapeDtypeStruct((N, H, W, Cout), jnp.float32),
            jax.ShapeDtypeStruct((N, HT, 2, Cout), jnp.float32),
        ),
        grid_spec=pltpu.PrefetchScalarGridSpec(
            num_scalar_prefetch=0,
            grid=(N, HT),
            in_specs=[
                # full padded image per n, resident across all row tiles of n
                pl.BlockSpec((1, H + 2, W + 2, Cin), lambda n, t: (n, 0, 0, 0)),
                pl.BlockSpec((9 * Cin, Cout), lambda n, t: (0, 0)),
                pl.BlockSpec((1, Cout), lambda n, t: (0, 0)),
            ],
            out_specs=(
                pl.BlockSpec((1, tile_h, W, Cout), lambda n, t: (n, t, 0, 0)),
                pl.BlockSpec((1, 1, 2, Cout), lambda n, t: (n, t, 0, 0)),
            ),
        ),
        compiler_params=pltpu.CompilerParams(
            # no cross-iteration state -> both axes parallel (v7x: 2 TCs busy at N=1)
            dimension_semantics=("parallel", "parallel"),
            vmem_limit_bytes=32 * 1024 * 1024,
        ),
    )(xp, w_mat, b2)

    # ---- finalize InstanceNorm statistics on a tiny tensor ----
    s = stats.sum(axis=1)                                    # (N, 2, Cout)
    s = s.reshape(N, 2, c_out, r * r).sum(axis=-1)           # (N, 2, c_out)
    cnt = float(Hr * Wr)
    mean = s[:, 0] / cnt
    var = s[:, 1] / cnt - mean * mean                        # biased variance
    inv = lax.rsqrt(var + eps)

    # ---- pixel shuffle + normalization apply: ONE fused XLA transpose+affine
    #      pass over the big tensor (output is lane-dense NCHW, Wr last). ----
    y = conv_out.reshape(N, H, W, c_out, r, r)
    y = jnp.transpose(y, (0, 3, 1, 4, 2, 5)).reshape(N, c_out, Hr, Wr)
    out = (y - mean[:, :, None, None]) * inv[:, :, None, None]
    return out


# ----------------------------------------------------------------------------
# Pure-JAX reference (matches the kernel's precision choice: bf16 conv operands,
# f32 accumulation, f32 InstanceNorm).
# ----------------------------------------------------------------------------
def _reference(x_nchw, w_oihw, bias, r, eps=1e-5):
    N, Cin, H, W = x_nchw.shape
    Cout = w_oihw.shape[0]
    c_out = Cout // (r * r)
    x_nhwc = jnp.transpose(x_nchw, (0, 2, 3, 1)).astype(jnp.bfloat16)
    w_hwio = jnp.transpose(w_oihw, (2, 3, 1, 0)).astype(jnp.bfloat16)
    y = lax.conv_general_dilated(
        x_nhwc, w_hwio, window_strides=(1, 1), padding="SAME",
        dimension_numbers=("NHWC", "HWIO", "NHWC"),
        preferred_element_type=jnp.float32)
    y = y + bias[None, None, None, :].astype(jnp.float32)
    y = y.reshape(N, H, W, c_out, r, r)
    y = jnp.transpose(y, (0, 3, 1, 4, 2, 5)).reshape(N, c_out, H * r, W * r)
    mean = jnp.mean(y, axis=(2, 3), keepdims=True)
    var = jnp.mean((y - mean) ** 2, axis=(2, 3), keepdims=True)
    return (y - mean) * lax.rsqrt(var + eps)


# ----------------------------------------------------------------------------
# Deterministic parameter init (mirrors the torch module's shapes / orthogonal init)
# ----------------------------------------------------------------------------
def init_params(key, c_in, c_out, r):
    cout_total = c_out * r * r
    k_w, k_b = jax.random.split(key)
    flat = jax.random.normal(k_w, (c_in * 9, cout_total), jnp.float32)
    q, _ = jnp.linalg.qr(flat)                       # orthonormal columns
    gain = jnp.sqrt(2.0).astype(jnp.float32)         # calculate_gain('relu')
    w = (gain * q.T).reshape(cout_total, c_in, 3, 3)  # OIHW
    bound = 1.0 / jnp.sqrt(c_in * 9.0)
    b = jax.random.uniform(k_b, (cout_total,), jnp.float32, -bound, bound)
    return w, b


if __name__ == "__main__":
    key = jax.random.PRNGKey(0)
    k_x, k_p = jax.random.split(key)

    N, c_in, H, W = 2, 4, 16, 16
    c_out, r = 4, 2

    x = jax.random.normal(k_x, (N, c_in, H, W), jnp.float32)
    w, b = init_params(k_p, c_in, c_out, r)

    fwd = jax.jit(functools.partial(upsample_block_forward, upscale_factor=r))
    out = jax.block_until_ready(fwd(x, w, b))

    ref = _reference(x, w, b, r)
    assert out.shape == (N, c_out, H * r, W * r), out.shape
    err = float(jnp.max(jnp.abs(out - ref)))
    assert err < 1e-4, err

    print("KERNEL_OK")
</pallas_src>

<mosaic_0001>
module attributes {stable_mosaic.version = 11 : i64} {
  func.func @_conv3x3_stats_kernel(%arg0: i32, %arg1: i32, %arg2: memref<1x18x18x4xbf16, #tpu.memory_space<vmem>>, %arg3: memref<36x16xbf16, #tpu.memory_space<vmem>>, %arg4: memref<1x16xf32, #tpu.memory_space<vmem>>, %arg5: memref<1x8x16x16xf32, #tpu.memory_space<vmem>>, %arg6: memref<1x1x2x16xf32, #tpu.memory_space<vmem>>) attributes {dimension_semantics = [#tpu.dimension_semantics<parallel>, #tpu.dimension_semantics<parallel>], iteration_bounds = array<i64: 2, 2>, scalar_prefetch = 0 : i64, scratch_operands = 0 : i64, tpu.core_type = #tpu.core_type<tc>, window_params = [{transform_indices = @transform_0, window_bounds = array<i64: 1, 18, 18, 4>}, {pipeline_mode = #tpu.pipeline_mode<synchronous>, transform_indices = @transform_1, window_bounds = array<i64: 36, 16>}, {pipeline_mode = #tpu.pipeline_mode<synchronous>, transform_indices = @transform_2, window_bounds = array<i64: 1, 16>}, {transform_indices = @transform_3, window_bounds = array<i64: 1, 8, 16, 16>}, {transform_indices = @transform_4, window_bounds = array<i64: 1, 1, 2, 16>}]} {
    %c8_i32 = arith.constant 8 : i32
    %0 = arith.muli %arg1, %c8_i32 : i32
    %1 = tpu.assume_multiple %0, 8 : i32
    %c0 = arith.constant 0 : index
    %2 = arith.index_cast %1 : i32 to index
    %c0_0 = arith.constant 0 : index
    %c0_1 = arith.constant 0 : index
    %3 = vector.load %arg2[%c0, %2, %c0_0, %c0_1] : memref<1x18x18x4xbf16, #tpu.memory_space<vmem>>, vector<1x10x18x4xbf16>
    %4 = vector.shape_cast %3 : vector<1x10x18x4xbf16> to vector<10x18x4xbf16>
    %5 = vector.extract_strided_slice %4 {offsets = [0, 0, 0], sizes = [8, 16, 4], strides = [1, 1, 1]} : vector<10x18x4xbf16> to vector<8x16x4xbf16>
    %6 = vector.extract_strided_slice %4 {offsets = [0, 1, 0], sizes = [8, 16, 4], strides = [1, 1, 1]} : vector<10x18x4xbf16> to vector<8x16x4xbf16>
    %7 = vector.extract_strided_slice %4 {offsets = [0, 2, 0], sizes = [8, 16, 4], strides = [1, 1, 1]} : vector<10x18x4xbf16> to vector<8x16x4xbf16>
    %8 = vector.extract_strided_slice %4 {offsets = [1, 0, 0], sizes = [8, 16, 4], strides = [1, 1, 1]} : vector<10x18x4xbf16> to vector<8x16x4xbf16>
    %9 = vector.extract_strided_slice %4 {offsets = [1, 1, 0], sizes = [8, 16, 4], strides = [1, 1, 1]} : vector<10x18x4xbf16> to vector<8x16x4xbf16>
    %10 = vector.extract_strided_slice %4 {offsets = [1, 2, 0], sizes = [8, 16, 4], strides = [1, 1, 1]} : vector<10x18x4xbf16> to vector<8x16x4xbf16>
    %11 = vector.extract_strided_slice %4 {offsets = [2, 0, 0], sizes = [8, 16, 4], strides = [1, 1, 1]} : vector<10x18x4xbf16> to vector<8x16x4xbf16>
    %12 = vector.extract_strided_slice %4 {offsets = [2, 1, 0], sizes = [8, 16, 4], strides = [1, 1, 1]} : vector<10x18x4xbf16> to vector<8x16x4xbf16>
    %13 = vector.extract_strided_slice %4 {offsets = [2, 2, 0], sizes = [8, 16, 4], strides = [1, 1, 1]} : vector<10x18x4xbf16> to vector<8x16x4xbf16>
    %14 = tpu.concatenate %5, %6, %7, %8, %9, %10, %11, %12, %13 in 2 : vector<8x16x4xbf16>, vector<8x16x4xbf16>, vector<8x16x4xbf16>, vector<8x16x4xbf16>, vector<8x16x4xbf16>, vector<8x16x4xbf16>, vector<8x16x4xbf16>, vector<8x16x4xbf16>, vector<8x16x4xbf16> -> vector<8x16x36xbf16>
    %15 = vector.shape_cast %14 : vector<8x16x36xbf16> to vector<128x36xbf16>
    %c0_2 = arith.constant 0 : index
    %c0_3 = arith.constant 0 : index
    %16 = vector.load %arg3[%c0_2, %c0_3] : memref<36x16xbf16, #tpu.memory_space<vmem>>, vector<36x16xbf16>
    %cst = arith.constant dense<0.000000e+00> : vector<128x16xf32>
    %17 = tpu.matmul %15, %16, %cst {dimension_numbers = #tpu.dot_dimension_numbers<[1], [0], [0], [1], [0, 0, 1, 1], [], []>} : vector<128x36xbf16>, vector<36x16xbf16>, vector<128x16xf32> -> vector<128x16xf32>
    %c0_4 = arith.constant 0 : index
    %c0_5 = arith.constant 0 : index
    %18 = vector.load %arg4[%c0_4, %c0_5] : memref<1x16xf32, #tpu.memory_space<vmem>>, vector<1x16xf32>
    %19 = vector.broadcast %18 : vector<1x16xf32> to vector<128x16xf32>
    %20 = arith.addf %17, %19 : vector<128x16xf32>
    %21 = vector.shape_cast %20 : vector<128x16xf32> to vector<8x16x16xf32>
    %c0_6 = arith.constant 0 : index
    %c0_7 = arith.constant 0 : index
    %c0_8 = arith.constant 0 : index
    %c0_9 = arith.constant 0 : index
    %22 = vector.load %arg5[%c0_6, %c0_7, %c0_8, %c0_9] : memref<1x8x16x16xf32, #tpu.memory_space<vmem>>, vector<1x8x16x16xf32>
    %23 = vector.shape_cast %22 : vector<1x8x16x16xf32> to vector<8x16x16xf32>
    %24 = vector.shape_cast %21 : vector<8x16x16xf32> to vector<1x8x16x16xf32>
    tpu.vector_store %arg5[%c0_6, %c0_7, %c0_8, %c0_9], %24 {strides = array<i32>} : memref<1x8x16x16xf32, #tpu.memory_space<vmem>>, vector<1x8x16x16xf32>,
    %cst_10 = arith.constant dense<0.000000e+00> : vector<16xf32>
    %25 = vector.multi_reduction <add>, %20, %cst_10 [0] : vector<128x16xf32> to vector<16xf32>
    %26 = vector.shape_cast %25 : vector<16xf32> to vector<1x16xf32>
    %27 = arith.mulf %20, %20 : vector<128x16xf32>
    %cst_11 = arith.constant dense<0.000000e+00> : vector<16xf32>
    %28 = vector.multi_reduction <add>, %27, %cst_11 [0] : vector<128x16xf32> to vector<16xf32>
    %29 = vector.shape_cast %28 : vector<16xf32> to vector<1x16xf32>
    %30 = tpu.concatenate %26, %29 in 0 : vector<1x16xf32>, vector<1x16xf32> -> vector<2x16xf32>
    %c0_12 = arith.constant 0 : index
    %c0_13 = arith.constant 0 : index
    %c0_14 = arith.constant 0 : index
    %c0_15 = arith.constant 0 : index
    %31 = vector.load %arg6[%c0_12, %c0_13, %c0_14, %c0_15] : memref<1x1x2x16xf32, #tpu.memory_space<vmem>>, vector<1x1x2x16xf32>
    %32 = vector.shape_cast %31 : vector<1x1x2x16xf32> to vector<2x16xf32>
    %33 = vector.shape_cast %30 : vector<2x16xf32> to vector<1x1x2x16xf32>
    tpu.vector_store %arg6[%c0_12, %c0_13, %c0_14, %c0_15], %33 {strides = array<i32>} : memref<1x1x2x16xf32, #tpu.memory_space<vmem>>, vector<1x1x2x16xf32>,
    return
  }
  func.func @transform_0(%arg0: i32, %arg1: i32) -> (i32, i32, i32, i32) {
    %c0_i32 = arith.constant 0 : i32
    %c0_i32_0 = arith.constant 0 : i32
    %c0_i32_1 = arith.constant 0 : i32
    %c0_i32_2 = arith.constant 0 : i32
    return %arg0, %c0_i32, %c0_i32_0, %c0_i32_1 : i32, i32, i32, i32
  }
  func.func @transform_1(%arg0: i32, %arg1: i32) -> (i32, i32) {
    %c0_i32 = arith.constant 0 : i32
    %c0_i32_0 = arith.constant 0 : i32
    %c0_i32_1 = arith.constant 0 : i32
    return %c0_i32, %c0_i32_0 : i32, i32
  }
  func.func @transform_2(%arg0: i32, %arg1: i32) -> (i32, i32) {
    %c0_i32 = arith.constant 0 : i32
    %c0_i32_0 = arith.constant 0 : i32
    %c0_i32_1 = arith.constant 0 : i32
    return %c0_i32, %c0_i32_0 : i32, i32
  }
  func.func @transform_3(%arg0: i32, %arg1: i32) -> (i32, i32, i32, i32) {
    %c0_i32 = arith.constant 0 : i32
    %c0_i32_0 = arith.constant 0 : i32
    %c0_i32_1 = arith.constant 0 : i32
    return %arg0, %arg1, %c0_i32, %c0_i32_0 : i32, i32, i32, i32
  }
  func.func @transform_4(%arg0: i32, %arg1: i32) -> (i32, i32, i32, i32) {
    %c0_i32 = arith.constant 0 : i32
    %c0_i32_0 = arith.constant 0 : i32
    %c0_i32_1 = arith.constant 0 : i32
    return %arg0, %arg1, %c0_i32, %c0_i32_0 : i32, i32, i32, i32
  }
}

</mosaic_0001>

<bundles_post_ra>
// kernel: upsample_block_forward.1
= control target key start
LH: loop header
LB: loop body
LE: loop exit
PB: predicated region body
PF: predicated region fallthrough
CT: control target
= control target key end

     0   :  { %s1405_s15 = smov 0   ;;  %s1407_s16 = smov 0   ;;  %s1875_s0 = inlined_call_operand.vmem [shape: bf16[2,18,18,4], index: 0, kind: input, shape index: {}]   ;;  %s1876_s1 = inlined_call_operand.vmem [shape: bf16[36,16], index: 1, kind: input, shape index: {}]   ;;  %s1877_s2 = inlined_call_operand.vmem [shape: f32[1,16], index: 2, kind: input, shape index: {}]   ;;  %s1878_s3 = inlined_call_operand.vmem [shape: f32[2,16,16,16], index: 3, kind: output, shape index: {0}]   ;;  %s1879_s4 = inlined_call_operand.vmem [shape: f32[2,2,2,16], index: 4, kind: output, shape index: {1}]  }
   0x1   :  { %s1409_s17 = smov 0   ;;  %s1411_s18 = smov 0  }
   0x2   :  { %s1413_s19 = smov 0  }
   0x3 LB: > { %s24_s20 = sadd.s32 1, %s1362_s17  ;;  %s27_s21 = sadd.s32 1, %s1366_s18  ;;  %s1370_s19 = sphi %s1413_s19, %s15_s19   ;;  %s1366_s18 = sphi %s1411_s18, %s1883_s18   ;;  %s1362_s17 = sphi %s1409_s17, %s1882_s17   ;;  %s1358_s16 = sphi %s1407_s16, %s1881_s16   ;;  %s1354_s15 = sphi %s1405_s15, %s1880_s15  }
   0x4   : > { %p25_p0 = scmp.ge.s32.totalorder %s24_s20, 2  ;;  %p1173_p1 = scmp.ge.s32.totalorder %s1370_s19, 1 }
   0x5   : > { %p181_p2 = scmp.lt.s32.totalorder %s1370_s19, 5 }
   0x6   : > { %s1885_s20 = smov (%p25_p0, %s24_s20), 0  ;;  %s1887_s21 = smov (!%p25_p0, %s27_s21), %s1366_s18 }
   0x7   : > { %p182_p3 = pnand %p1173_p1, %p181_p2  ;;  %p29_p4 = scmp.ge.s32.totalorder %s1887_s21, 2 }
   0x8   : > { %p220_p5 = scmp.lt.s32.totalorder (!%p182_p3), %s1358_s16, 1  ;;  %s1218_s22 = smul.u32 (!%p182_p3), 96, %s1354_s15  ;;  %vm456_vm0 = vcmask (!%p182_p3), 1046528   ;;  %vm343_vm1 = vsmask.f32 (!%p182_p3), 7424  ;;  %vm819_vm2 = vcmask (!%p182_p3), 1041408  }
   0x9   : > { %s1889_s21 = smov (%p29_p4, %s1887_s21), 0  ;;  %185 = sbr.rel (%p182_p3) target bundleno = 503 (0x1f7), region = 32 }
   0xa   : > { %s1372_s28 = smov (!%p182_p3), 12   ;;  %s1373_s29 = smov (!%p182_p3), 20   ;;  %vm639_vm3 = vcmask (!%p182_p3), 31744   ;;  %vm656_vm4 = vcmask (!%p182_p3), 64512   ;;  %vm673_vm5 = vcmask (!%p182_p3), 97280   ;;  %vm690_vm6 = vcmask (!%p182_p3), 130048  }
   0xb   : > { %s1374_s30 = smov (!%p182_p3), 8   ;;  %s1375_s5 = smov (!%p182_p3), 4   ;;  %vm707_vm7 = vcmask (!%p182_p3), 162816   ;;  %vm724_vm8 = vcmask (!%p182_p3), 195584   ;;  %vm741_vm9 = vcmask (!%p182_p3), 228352   ;;  %vm758_vm10 = vcmask (!%p182_p3), 261120  }
   0xc   : > { %s1376_s6 = smov (!%p182_p3), 16   ;;  %s1377_s9 = smov (!%p182_p3), 24   ;;  %vm802_vm11 = vcmask (!%p182_p3), 293888   ;;  %vm1026_vm12 = vcmask (!%p182_p3), 1040384   ;;  %vm1028_vm13 = vcmask (!%p182_p3), 123904  }
   0xd   : > { %s1378_s12 = smov (!%p182_p3), 28   ;;  %p238_p7 = scmp.lt.s32.totalorder (!%p182_p3), %s1354_s15, 1 }
  0x10   : > { %s1891_s16 = smov (!%p220_p5, %s1358_s16), 1 }
  0x11   : > { %s1260_s23 = smul.u32 216, %s1891_s16  ;;  %s1177_s25 = sshll.u32 %s1891_s16, 5 }
  0x12   : > { %s1179_s7 = sshll.u32 %s1891_s16, 1 }
  0x13   : > { %s224_s26 = scalar_lea.vmem %s1875_s0, %s1260_s23  ;;  %s1175_s23 = sshll.u32 %s1354_s15, 3 }
  0x14   : > { %s1444_s27 = scalar_lea.vmem %s224_s26, %s1218_s22  ;;  %s1379_s22 = smov 32  }
  0x15   : > { %v1447_v0 = vld [vmem:[%s1444_s27 + $0x18] sm:$0xff]   ;;  %v1450_v1 = vld [vmem:[%s1444_s27 + $0xc] sm:$0xff]   ;;  %v1311_v2 = vld [vmem:[%s1444_s27 + $0x14] ss:$0 sps:$4 sm:$0x11]   ;;  %p228_p6 = scmp.lt.s32.totalorder %s1175_s23, 15 }
  0x16   : > { %504 = vrot.lane.b32.xlu1 %v1447_v0, %s1372_s28  ;;  %v1456_v3 = vld [vmem:[%s1444_s27] sm:$0xff]   ;;  %502 = vrot.lane.b32.xlu0 %v1450_v1, %s1372_s28  ;;  %v460_v4 = vrot.slane %v1450_v1, 1  ;;  %v461_v5 = vrot.slane %v1311_v2, 1  ;;  %v1313_v6 = vld [vmem:[%s1444_s27 + $0x8] ss:$0 sps:$4 sm:$0x11]  }
  0x17   : > { %v457_v7 = vrot.slane %v1456_v3, 1  ;;  %v345_v8 = vshrl.u32 %v1456_v3, 16  ;;  %v347_v9 = vshll.u32 %v1456_v3, 16  ;;  %v357_v10 = vshrl.u32 %v1450_v1, 16  ;;  %v1473_v22 = vld [vmem:[%s1444_s27 + $0x24] sm:$0xff]   ;;  %v1508_v53 = vld [vmem:[%s1444_s27 + $0x54] sm:$0xff]  }
  0x18   : > { %v462_v11 = vsel %vm456_vm0, %v460_v4, %v461_v5  ;;  %v458_v12 = vrot.slane %v1313_v6, 1  ;;  %v352_v13 = vshll.u32 %v1313_v6, 16  ;;  %v1314_v14 = vld [vmem:[%s1444_s27 + $0x20] ss:$0 sps:$4 sm:$0x11]   ;;  %v359_v15 = vshll.u32 %v1450_v1, 16 }
  0x19   : > { %v349_v16 = vrot.slane %v347_v9, 1  ;;  %v364_v17 = vshll.u32 %v1311_v2, 16  ;;  %v371_v18 = vshll.u32 %v1447_v0, 16  ;;  %v463_v24 = vrot.slane %v1447_v0, 1  ;;  %v1490_v38 = vld [vmem:[%s1444_s27 + $0x48] sm:$0xff]   ;;  %v1518_v59 = vld [vmem:[%s1444_s27 + $0x60] sm:$0xff]  }
  0x1a   : > { %552 = vrot.lane.b32.xlu0 %v462_v11, %s1373_s29  ;;  %v459_v19 = vsel %vm456_vm0, %v457_v7, %v458_v12  ;;  %v354_v20 = vrot.slane %v352_v13, 1  ;;  %v361_v21 = vrot.slane %v359_v15, 1  ;;  %v369_v26 = vshrl.u32 %v1447_v0, 16  ;;  %v1481_v32 = vld [vmem:[%s1444_s27 + $0x2c] ss:$0 sps:$4 sm:$0x11]  }
  0x1b   : > { %481 = vrot.lane.b32.xlu1 %v459_v19, %s1374_s30  ;;  %v350_v23 = vor.u32 %v349_v16, %v345_v8  ;;  %v366_v25 = vrot.slane %v364_v17, 1  ;;  %v464_v27 = vrot.slane %v1314_v14, 1  ;;  %v373_v29 = vrot.slane %v371_v18, 1  ;;  %v1322_v45 = vld [vmem:[%s1444_s27 + $0x50] ss:$0 sps:$4 sm:$0x11]  }
  0x1c   : > { %v362_v28 = vor.u32 %v361_v21, %v357_v10  ;;  %v376_v30 = vshll.u32 %v1314_v14, 16  ;;  %v383_v33 = vshll.u32 %v1473_v22, 16  ;;  %v381_v39 = vshrl.u32 %v1473_v22, 16  ;;  %v1324_v55 = vld [vmem:[%s1444_s27 + $0x5c] ss:$0 sps:$4 sm:$0x11]  }
  0x1d   : > { %v355_v31 = vsel %vm343_vm1, %v350_v23, %v354_v20  ;;  %v1487_v35 = vsel %vm456_vm0, %v463_v24, %v464_v27  ;;  %v374_v36 = vor.u32 %v373_v29, %v369_v26  ;;  %v388_v41 = vshll.u32 %v1481_v32, 16  ;;  %v1521_v60 = vld [vmem:[%s1444_s27 + $0x6c] sm:$0xff]   ;;  %v1329_v4 = vld [vmem:[%s1876_s1] sm:$0xff]   ;;  %v1326_v7 = vld [vmem:[%s1444_s27 + $0x68] ss:$0 sps:$4 sm:$0x11]  }
  0x1e   : > { %440 = vrot.lane.b32.xlu0 %v355_v31, %s1375_s5  ;;  %v367_v34 = vsel %vm343_vm1, %v362_v28, %v366_v25  ;;  %v378_v37 = vrot.slane %v376_v30, 1  ;;  %v385_v40 = vrot.slane %v383_v33, 1  ;;  %v466_v43 = vrot.slane %v1473_v22, 1  ;;  %1230 = vmatprep.subr.bf16.mxu0 %v1329_v4  ;;  %v1330_v14 = vld [vmem:[%s1876_s1 + $0x8] sm:$0xff]   ;;  %v1566_v33 = vld [vmem:[%s1444_s27 + $0x30] sm:$0xff]   ;;  %s1893_s23 = smov (!%p228_p6, %s1175_s23), 15 }
  0x1f   : > { %483 = vrot.lane.b32.xlu1 %v462_v11, %s1374_s30  ;;  %v467_v44 = vrot.slane %v1481_v32, 1  ;;  %v417_v46 = vshrl.u32 %v1490_v38, 16  ;;  %v419_v47 = vshll.u32 %v1490_v38, 16  ;;  %v475_v48 = vrot.slane %v1490_v38, 1  ;;  %1231 = vmatpush3.bf16.msra.mxu0 %v1329_v4  ;;  %s1176_s24 = sshll.u32 %s1893_s23, 1  ;;  %s1895_s15 = smov (!%p238_p7, %s1354_s15), 1 }
  0x20   : > { %v1498_v42 = vsel %vm343_vm1, %v374_v36, %v378_v37  ;;  %v386_v49 = vor.u32 %v385_v40, %v381_v39  ;;  %v390_v50 = vrot.slane %v388_v41, 1  ;;  %v424_v51 = vshll.u32 %v1322_v45, 16  ;;  %1252 = vmatprep.subr.bf16.mxu1 %v1329_v4  ;;  %v1328_v20 = vld [vmem:[%s1444_s27 + $0x74] ss:$0 sps:$4 sm:$0x11]   ;;  %1232 = vmatprep.subr.bf16.mxu0 %v1330_v14  ;;  %s232_s26 = sadd.s32 %s1177_s25, %s1176_s24  ;;  %s241_s8 = sadd.s32 %s1179_s7, %s1895_s15 }
  0x21   : > { %v476_v52 = vrot.slane %v1322_v45, 1  ;;  %v421_v54 = vrot.slane %v419_v47, 1  ;;  %v429_v58 = vshrl.u32 %v1508_v53, 16  ;;  %v431_v62 = vshll.u32 %v1508_v53, 16  ;;  %1255 = vmatpush3.bf16.msra.mxu1 %v1329_v4 }
  0x22   : > { %442 = vrot.lane.b32.xlu0 %v367_v34, %s1375_s5  ;;  %v426_v56 = vrot.slane %v424_v51, 1  ;;  %v436_v63 = vshll.u32 %v1324_v55, 16  ;;  %v478_v2 = vrot.slane %v1508_v53, 1  ;;  %v1531_v5 = vsel %vm343_vm1, %v386_v49, %v390_v50  ;;  %1253 = vmatprep.subr.bf16.mxu1 %v1330_v14  ;;  %v1331_v31 = vld [vmem:[%s1876_s1 + $0x10] ss:$0 sps:$4 sm:$0x33]  }
  0x23   : > { %554 = vrot.lane.b32.xlu1 %v1487_v35, %s1373_s29  ;;  %v1514_v57 = vsel %vm456_vm0, %v475_v48, %v476_v52  ;;  %v422_v61 = vor.u32 %v421_v54, %v417_v46  ;;  %v479_v6 = vrot.slane %v1324_v55, 1  ;;  %v522_v8 = vshrl.u32 %v1518_v59, 16  ;;  %1233 = vmatpush3.bf16.msra.mxu0 %v1330_v14  ;;  %v1318_v46 = vld [vmem:[%s1444_s27 + $0x38] ss:$0 sps:$4 sm:$0x11]   ;;  %v1596_v50 = vld [vmem:[%s1444_s27 + $0x3c] sm:$0xff]  }
  0x24   : > { %v524_v9 = vshll.u32 %v1518_v59, 16  ;;  %v433_v11 = vrot.slane %v431_v62, 1  ;;  %v438_v12 = vrot.slane %v436_v63, 1  ;;  %v549_v13 = vrot.slane %v1518_v59, 1  ;;  %1258 = vmatprep.subr.msk.bf16.mxu0 %vm819_vm2, %v1331_v31 }
  0x25   : > { %v1539_v10 = vsel %vm343_vm1, %v422_v61, %v426_v56  ;;  %v1546_v15 = vsel %vm456_vm0, %v478_v2, %v479_v6  ;;  %v529_v17 = vshll.u32 %v1326_v7, 16  ;;  %v550_v18 = vrot.slane %v1326_v7, 1  ;;  %1256 = vmatpush3.bf16.msra.mxu1 %v1330_v14  ;;  %v1320_v55 = vld [vmem:[%s1444_s27 + $0x44] ss:$0 sps:$4 sm:$0x11]   ;;  %s1178_s27 = sshll.u32 %s232_s26, 3 }
  0x26   : > { %533 = vrot.lane.b32.xlu0 %v367_v34, %s1376_s6  ;;  %v526_v16 = vrot.slane %v524_v9, 1  ;;  %v434_v19 = vor.u32 %v433_v11, %v429_v58  ;;  %v593_v21 = vshrl.u32 %v1521_v60, 16  ;;  %v595_v26 = vshll.u32 %v1521_v60, 16  ;;  %1259 = vmatprep.subr.msk.bf16.mxu1 %vm819_vm2, %v1331_v31 }
  0x27   : > { %535 = vrot.lane.b32.xlu1 %v1498_v42, %s1376_s6  ;;  %v531_v24 = vrot.slane %v529_v17, 1  ;;  %v1553_v25 = vsel %vm456_vm0, %v549_v13, %v550_v18  ;;  %v600_v28 = vshll.u32 %v1328_v20, 16  ;;  %v620_v29 = vrot.slane %v1521_v60, 1 }
  0x28   : > { %v527_v23 = vor.u32 %v526_v16, %v522_v8  ;;  %v1559_v27 = vsel %vm343_vm1, %v434_v19, %v438_v12  ;;  %v621_v30 = vrot.slane %v1328_v20, 1  ;;  %v597_v36 = vrot.slane %v595_v26, 1 }
  0x29   : > { %v602_v37 = vrot.slane %v600_v28, 1  ;;  %v468_v41 = vsel %vm456_vm0, %v466_v43, %v467_v44  ;;  %v821_v45 = vsel %vm819_vm2, %v1331_v31, 0  ;;  %v395_v47 = vshll.u32 %v1566_v33, 16 }
  0x2a   : > { %573 = vrot.lane.b32.xlu0 %v1447_v0, %s1377_s9  ;;  %v1569_v34 = vsel %vm343_vm1, %v527_v23, %v531_v24  ;;  %v1572_v39 = vsel %vm456_vm0, %v620_v29, %v621_v30  ;;  %v598_v40 = vor.u32 %v597_v36, %v593_v21  ;;  %1235 = vmatpush3.bf16.msra.mxu0 %v821_v45  ;;  %v393_v32 = vshrl.u32 %v1566_v33, 16 }
  0x2b   : > { %575 = vrot.lane.b32.xlu1 %v1473_v22, %s1377_s9  ;;  %1257 = vmatpush3.bf16.msra.mxu1 %v821_v45  ;;  %v400_v43 = vshll.u32 %v1318_v46, 16  ;;  %v469_v52 = vrot.slane %v1566_v33, 1  ;;  %v470_v54 = vrot.slane %v1318_v46, 1  ;;  %v405_v58 = vshrl.u32 %v1596_v50, 16 }
  0x2c   : > { %v1586_v48 = vsel %vm343_vm1, %v598_v40, %v602_v37  ;;  %v412_v62 = vshll.u32 %v1320_v55, 16  ;;  %v473_v6 = vrot.slane %v1320_v55, 1 }
  0x2d   : > { %v402_v49 = vrot.slane %v400_v43, 1  ;;  %v471_v56 = vsel %vm456_vm0, %v469_v52, %v470_v54 }
  0x2e   : > { %604 = vrot.lane.b32.xlu0 %v1498_v42, %s1378_s12  ;;  %v414_v2 = vrot.slane %v412_v62, 1 }
  0x2f   : > { %606 = vrot.lane.b32.xlu1 %v1531_v5, %s1378_s12 }
  0x32   : > { %623 = vrot.lane.b32.xlu0 %v1487_v35, %s1379_s22 }
  0x33   : > { %444 = vrot.lane.b32.xlu1 %v1498_v42, %s1375_s5  ;;  %v397_v42 = vrot.slane %v395_v47, 1 }
  0x35   : > { %v398_v44 = vor.u32 %v397_v42, %v393_v32 }
  0x36   : > { %625 = vrot.lane.b32.xlu0 %v468_v41, %s1379_s22 }
  0x37   : > { %446 = vrot.lane.b32.xlu1 %v1531_v5, %s1375_s5  ;;  %v403_v51 = vsel %vm343_vm1, %v398_v44, %v402_v49 }
  0x3a   : > { %485 = vrot.lane.b32.xlu0 %v1487_v35, %s1374_s30  ;;  %v407_v35 = vshll.u32 %v1596_v50, 16 }
  0x3b   : > { %487 = vrot.lane.b32.xlu1 %v468_v41, %s1374_s30 }
  0x3c   : > { %v409_v61 = vrot.slane %v407_v35, 1 }
  0x3e   : > { %506 = vrot.lane.b32.xlu0 %v1473_v22, %s1372_s28  ;;  %v410_v63 = vor.u32 %v409_v61, %v405_v58 }
  0x3f   : > { %508 = vrot.lane.b32.xlu1 %v1566_v33, %s1372_s28 }
  0x40   : > { %v415_v4 = vsel %vm343_vm1, %v410_v63, %v414_v2 }
  0x42   : > { %537 = vrot.lane.b32.xlu0 %v1531_v5, %s1376_s6  ;;  %v472_v5 = vrot.slane %v1596_v50, 1 }
  0x43   : > { %539 = vrot.lane.b32.xlu1 %v403_v51, %s1376_s6 }
  0x44   : > { %v474_v7 = vsel %vm456_vm0, %v472_v5, %v473_v6 }
  0x46   : > { %556 = vrot.lane.b32.xlu0 %v468_v41, %s1373_s29 }
  0x47   : > { %558 = vrot.lane.b32.xlu1 %v471_v56, %s1373_s29 }
  0x4a   : > { %577 = vrot.lane.b32.xlu0 %v1566_v33, %s1377_s9 }
  0x4b   : > { %579 = vrot.lane.b32.xlu1 %v1596_v50, %s1377_s9 }
  0x4e   : > { %608 = vrot.lane.b32.xlu0 %v403_v51, %s1378_s12 }
  0x4f   : > { %610 = vrot.lane.b32.xlu1 %v415_v4, %s1378_s12 }
  0x52   : > { %627 = vrot.lane.b32.xlu0 %v471_v56, %s1379_s22 }
  0x53   : > { %448 = vrot.lane.b32.xlu1 %v403_v51, %s1375_s5 }
  0x56   : > { %629 = vrot.lane.b32.xlu0 %v474_v7, %s1379_s22 }
  0x57   : > { %450 = vrot.lane.b32.xlu1 %v415_v4, %s1375_s5 }
  0x5a   : > { %489 = vrot.lane.b32.xlu0 %v471_v56, %s1374_s30 }
  0x5b   : > { %491 = vrot.lane.b32.xlu1 %v474_v7, %s1374_s30 }
  0x5e   : > { %510 = vrot.lane.b32.xlu0 %v1596_v50, %s1372_s28 }
  0x5f   : > { %512 = vrot.lane.b32.xlu1 %v1490_v38, %s1372_s28 }
  0x62   : > { %541 = vrot.lane.b32.xlu0 %v415_v4, %s1376_s6 }
  0x63   : > { %543 = vrot.lane.b32.xlu1 %v1539_v10, %s1376_s6 }
  0x66   : > { %560 = vrot.lane.b32.xlu0 %v474_v7, %s1373_s29 }
  0x67   : > { %562 = vrot.lane.b32.xlu1 %v1514_v57, %s1373_s29 }
  0x6a   : > { %581 = vrot.lane.b32.xlu0 %v1490_v38, %s1377_s9 }
  0x6b   : > { %583 = vrot.lane.b32.xlu1 %v1508_v53, %s1377_s9 }
  0x6e   : > { %612 = vrot.lane.b32.xlu0 %v1539_v10, %s1378_s12 }
  0x6f   : > { %614 = vrot.lane.b32.xlu1 %v1559_v27, %s1378_s12 }
  0x72   : > { %631 = vrot.lane.b32.xlu0 %v1514_v57, %s1379_s22 }
  0x73   : > { %452 = vrot.lane.b32.xlu1 %v1539_v10, %s1375_s5 }
  0x76   : > { %633 = vrot.lane.b32.xlu0 %v1546_v15, %s1379_s22 }
  0x77   : > { %454 = vrot.lane.b32.xlu1 %v1559_v27, %s1375_s5 }
  0x7a   : > { %493 = vrot.lane.b32.xlu0 %v1514_v57, %s1374_s30 }
  0x7b   : > { %495 = vrot.lane.b32.xlu1 %v1546_v15, %s1374_s30 }
  0x7e   : > { %514 = vrot.lane.b32.xlu0 %v1508_v53, %s1372_s28 }
  0x7f   : > { %516 = vrot.lane.b32.xlu1 %v1518_v59, %s1372_s28 }
  0x82   : > { %545 = vrot.lane.b32.xlu0 %v1559_v27, %s1376_s6 }
  0x83   : > { %547 = vrot.lane.b32.xlu1 %v1569_v34, %s1376_s6  ;;  %s1772_s6 = scalar_lea.vmem %s1878_s3, %s1178_s27 }
  0x86   : > { %564 = vrot.lane.b32.xlu0 %v1546_v15, %s1373_s29 }
  0x87   : > { %566 = vrot.lane.b32.xlu1 %v1553_v25, %s1373_s29 }
  0x88   : > { %v505_v57 = vpop.permute.xlu1 %504  ;;  %v503_v8 = vpop.permute.xlu0 %502 }
  0x8a   : > { %585 = vrot.lane.b32.xlu0 %v1518_v59, %s1377_s9 }
  0x8b   : > { %587 = vrot.lane.b32.xlu1 %v1521_v60, %s1377_s9  ;;  %s1180_s9 = sshll.u32 %s241_s8, 1 }
  0x8c   : > { %v553_v9 = vpop.permute.xlu0 %552 }
  0x8d   : > { %v482_v10 = vpop.permute.xlu1 %481 }
  0x8e   : > { %616 = vrot.lane.b32.xlu0 %v1569_v34, %s1378_s12 }
  0x8f   : > { %618 = vrot.lane.b32.xlu1 %v1586_v48, %s1378_s12  ;;  %s243_s12 = scalar_lea.vmem %s1879_s4, %s1180_s9 }
  0x90   : > { %v441_v11 = vpop.permute.xlu0 %440 }
  0x91   : > { %v484_v12 = vpop.permute.xlu1 %483  ;;  %v641_v60 = vsel %vm639_vm3, %v1456_v3, %v441_v11 }
  0x92   : > { %635 = vrot.lane.b32.xlu0 %v1553_v25, %s1379_s22  ;;  %v658_v17 = vsel %vm656_vm4, %v641_v60, %v482_v10 }
  0x93   : > { %637 = vrot.lane.b32.xlu1 %v1572_v39, %s1379_s22  ;;  %v675_v21 = vsel %vm673_vm5, %v658_v17, %v503_v8 }
  0x94   : > { %v443_v59 = vpop.permute.xlu0 %442 }
  0x95   : > { %v555_v13 = vpop.permute.xlu1 %554  ;;  %v643_v16 = vsel %vm639_vm3, %v1450_v1, %v443_v59 }
  0x96   : > { %v660_v19 = vsel %vm656_vm4, %v643_v16, %v484_v12 }
  0x97   : > { %v677_v3 = vsel %vm673_vm5, %v660_v19, %v505_v57 }
  0x98   : > { %v534_v14 = vpop.permute.xlu0 %533 }
  0x99   : > { %v536_v15 = vpop.permute.xlu1 %535  ;;  %v692_v23 = vsel %vm690_vm6, %v675_v21, %v534_v14 }
  0x9a   : > { %v709_v1 = vsel %vm707_vm7, %v692_v23, %v553_v9  ;;  %v694_v26 = vsel %vm690_vm6, %v677_v3, %v536_v15 }
  0x9b   : > { %v711_v34 = vsel %vm707_vm7, %v694_v26, %v555_v13 }
  0x9c   : > { %v574_v18 = vpop.permute.xlu0 %573 }
  0x9d   : > { %v576_v20 = vpop.permute.xlu1 %575  ;;  %v726_v27 = vsel %vm724_vm8, %v709_v1, %v574_v18 }
  0x9e   : > { %v728_v36 = vsel %vm724_vm8, %v711_v34, %v576_v20 }
  0xa0   : > { %v605_v24 = vpop.permute.xlu0 %604 }
  0xa1   : > { %v607_v25 = vpop.permute.xlu1 %606  ;;  %v743_v28 = vsel %vm741_vm9, %v726_v27, %v605_v24 }
  0xa2   : > { %v745_v37 = vsel %vm741_vm9, %v728_v36, %v607_v25 }
  0xa4   : > { %v624_v29 = vpop.permute.xlu0 %623 }
  0xa5   : > { %v445_v30 = vpop.permute.xlu1 %444  ;;  %v760_v31 = vsel %vm758_vm10, %v743_v28, %v624_v29 }
  0xa6   : > { %1236 = vmatprep.mubr.msk.bf16.mxu0 %vm802_vm11, %v760_v31  ;;  %v645_v52 = vsel %vm639_vm3, %v1447_v0, %v445_v30 }
  0xa8   : > { %v626_v39 = vpop.permute.xlu0 %625 }
  0xa9   : > { %v447_v40 = vpop.permute.xlu1 %446  ;;  %v762_v41 = vsel %vm758_vm10, %v745_v37, %v626_v39 }
  0xaa   : > { %1237 = vmatmul.mubr.msk.bf16.vlgmr.msra.gmra.mrb[0].mxu0 %vm802_vm11, %v762_v41  ;;  %v647_v61 = vsel %vm639_vm3, %v1473_v22, %v447_v40 }
  0xac   : > { %v486_v45 = vpop.permute.xlu0 %485 }
  0xad   : > { %v488_v46 = vpop.permute.xlu1 %487  ;;  %v662_v54 = vsel %vm656_vm4, %v645_v52, %v486_v45 }
  0xae   : > { %v664_v63 = vsel %vm656_vm4, %v647_v61, %v488_v46 }
  0xb0   : > { %v507_v47 = vpop.permute.xlu0 %506 }
  0xb1   : > { %v509_v48 = vpop.permute.xlu1 %508  ;;  %v679_v55 = vsel %vm673_vm5, %v662_v54, %v507_v47 }
  0xb2   : > { %v681_v4 = vsel %vm673_vm5, %v664_v63, %v509_v48 }
  0xb4   : > { %v538_v32 = vpop.permute.xlu0 %537 }
  0xb5   : > { %v540_v42 = vpop.permute.xlu1 %539  ;;  %v696_v56 = vsel %vm690_vm6, %v679_v55, %v538_v32 }
  0xb6   : > { %v698_v6 = vsel %vm690_vm6, %v681_v4, %v540_v42 }
  0xb8   : > { %v557_v43 = vpop.permute.xlu0 %556 }
  0xb9   : > { %v559_v44 = vpop.permute.xlu1 %558  ;;  %v713_v62 = vsel %vm707_vm7, %v696_v56, %v557_v43 }
  0xba   : > { %v715_v8 = vsel %vm707_vm7, %v698_v6, %v559_v44 }
  0xbc   : > { %v578_v49 = vpop.permute.xlu0 %577 }
  0xbd   : > { %v580_v51 = vpop.permute.xlu1 %579  ;;  %v730_v2 = vsel %vm724_vm8, %v713_v62, %v578_v49 }
  0xbe   : > { %v732_v22 = vsel %vm724_vm8, %v715_v8, %v580_v51 }
  0xc0   : > { %v609_v35 = vpop.permute.xlu0 %608 }
  0xc1   : > { %v611_v58 = vpop.permute.xlu1 %610  ;;  %v747_v0 = vsel %vm741_vm9, %v730_v2, %v609_v35 }
  0xc2   : > { %v749_v9 = vsel %vm741_vm9, %v732_v22, %v611_v58 }
  0xc4   : > { %v628_v5 = vpop.permute.xlu0 %627 }
  0xc5   : > { %v449_v7 = vpop.permute.xlu1 %448  ;;  %v764_v57 = vsel %vm758_vm10, %v747_v0, %v628_v5 }
  0xc6   : > { %1240 = vmatprep.mubr.msk.bf16.mxu0 %vm802_vm11, %v764_v57  ;;  %v649_v21 = vsel %vm639_vm3, %v1566_v33, %v449_v7 }
  0xc8   : > { %v630_v10 = vpop.permute.xlu0 %629 }
  0xc9   : > { %v451_v11 = vpop.permute.xlu1 %450  ;;  %v766_v12 = vsel %vm758_vm10, %v749_v9, %v630_v10 }
  0xca   : > { %1241 = vmatmul.mubr.msk.bf16.gmra.mrb[4].mxu0 %vm802_vm11, %v766_v12  ;;  %v651_v26 = vsel %vm639_vm3, %v1596_v50, %v451_v11  ;;  %v1767_v11 = vld [vmem:[%s1877_s2] ss:$0 sm:$0xff] }
  0xcc   : > { %v490_v59 = vpop.permute.xlu0 %489 }
  0xcd   : > { %v492_v13 = vpop.permute.xlu1 %491  ;;  %v666_v23 = vsel %vm656_vm4, %v649_v21, %v490_v59 }
  0xce   : > { %v668_v28 = vsel %vm656_vm4, %v651_v26, %v492_v13 }
  0xd0   : > { %v511_v60 = vpop.permute.xlu0 %510 }
  0xd1   : > { %v513_v14 = vpop.permute.xlu1 %512  ;;  %v683_v3 = vsel %vm673_vm5, %v666_v23, %v511_v60 }
  0xd2   : > { %v685_v30 = vsel %vm673_vm5, %v668_v28, %v513_v14 }
  0xd4   : > { %v542_v15 = vpop.permute.xlu0 %541 }
  0xd5   : > { %v544_v16 = vpop.permute.xlu1 %543  ;;  %v700_v25 = vsel %vm690_vm6, %v683_v3, %v542_v15 }
  0xd6   : > { %v702_v34 = vsel %vm690_vm6, %v685_v30, %v544_v16 }
  0xd8   : > { %v561_v17 = vpop.permute.xlu0 %560 }
  0xd9   : > { %v563_v18 = vpop.permute.xlu1 %562  ;;  %v717_v27 = vsel %vm707_vm7, %v700_v25, %v561_v17 }
  0xda   : > { %v719_v39 = vsel %vm707_vm7, %v702_v34, %v563_v18 }
  0xdc   : > { %v582_v19 = vpop.permute.xlu0 %581 }
  0xdd   : > { %v584_v20 = vpop.permute.xlu1 %583  ;;  %v734_v29 = vsel %vm724_vm8, %v717_v27, %v582_v19 }
  0xde   : > { %v736_v50 = vsel %vm724_vm8, %v719_v39, %v584_v20 }
  0xe0   : > { %v613_v24 = vpop.permute.xlu0 %612 }
  0xe1   : > { %v615_v1 = vpop.permute.xlu1 %614  ;;  %v751_v33 = vsel %vm741_vm9, %v734_v29, %v613_v24 }
  0xe2   : > { %v753_v40 = vsel %vm741_vm9, %v736_v50, %v615_v1 }
  0xe4   : > { %v632_v31 = vpop.permute.xlu0 %631 }
  0xe5   : > { %v453_v36 = vpop.permute.xlu1 %452  ;;  %v768_v37 = vsel %vm758_vm10, %v751_v33, %v632_v31 }
  0xe6   : > { %1244 = vmatprep.mubr.msk.bf16.mxu1 %vm802_vm11, %v768_v37  ;;  %v653_v55 = vsel %vm639_vm3, %v1490_v38, %v453_v36 }
  0xe8   : > { %v634_v41 = vpop.permute.xlu0 %633 }
  0xe9   : > { %v455_v45 = vpop.permute.xlu1 %454  ;;  %v770_v46 = vsel %vm758_vm10, %v753_v40, %v634_v41 }
  0xea   : > { %1245 = vmatmul.mubr.msk.bf16.vlgmr.msra.gmra.mrb[0].mxu1 %vm802_vm11, %v770_v46  ;;  %v655_v35 = vsel %vm639_vm3, %v1508_v53, %v455_v45 }
  0xec   : > { %v494_v47 = vpop.permute.xlu0 %493 }
  0xed   : > { %v496_v48 = vpop.permute.xlu1 %495  ;;  %v670_v56 = vsel %vm656_vm4, %v653_v55, %v494_v47 }
  0xee   : > { %v672_v58 = vsel %vm656_vm4, %v655_v35, %v496_v48 }
  0xf0   : > { %v515_v32 = vpop.permute.xlu0 %514 }
  0xf1   : > { %v517_v42 = vpop.permute.xlu1 %516  ;;  %v687_v61 = vsel %vm673_vm5, %v670_v56, %v515_v32 }
  0xf2   : > { %v689_v63 = vsel %vm673_vm5, %v672_v58, %v517_v42 }
  0xf4   : > { %v546_v43 = vpop.permute.xlu0 %545 }
  0xf5   : > { %v548_v44 = vpop.permute.xlu1 %547  ;;  %v704_v2 = vsel %vm690_vm6, %v687_v61, %v546_v43 }
  0xf6   : > { %v706_v0 = vsel %vm690_vm6, %v689_v63, %v548_v44 }
  0xf8   : > { %v565_v49 = vpop.permute.xlu0 %564 }
  0xf9   : > { %v567_v51 = vpop.permute.xlu1 %566  ;;  %v721_v38 = vsel %vm707_vm7, %v704_v2, %v565_v49 }
  0xfa   : > { %v723_v53 = vsel %vm707_vm7, %v706_v0, %v567_v51 }
  0xfc   : > { %v586_v52 = vpop.permute.xlu0 %585 }
  0xfd   : > { %v588_v54 = vpop.permute.xlu1 %587  ;;  %v738_v5 = vsel %vm724_vm8, %v721_v38, %v586_v52 }
  0xfe   : > { %v740_v6 = vsel %vm724_vm8, %v723_v53, %v588_v54 }
 0x100   : > { %v617_v62 = vpop.permute.xlu0 %616 }
 0x101   : > { %v619_v4 = vpop.permute.xlu1 %618  ;;  %v755_v7 = vsel %vm741_vm9, %v738_v5, %v617_v62 }
 0x102   : > { %v757_v8 = vsel %vm741_vm9, %v740_v6, %v619_v4 }
 0x104   : > { %v636_v57 = vpop.permute.xlu0 %635 }
 0x105   : > { %v638_v22 = vpop.permute.xlu1 %637  ;;  %v772_v9 = vsel %vm758_vm10, %v755_v7, %v636_v57 }
 0x106   : > { %v774_v10 = vsel %vm758_vm10, %v757_v8, %v638_v22  ;;  %1248 = vmatprep.mubr.msk.bf16.mxu1 %vm802_vm11, %v772_v9 }
 0x107   : > { %1249 = vmatmul.mubr.msk.bf16.gmra.mrb[4].mxu1 %vm802_vm11, %v774_v10 }
 0x17d   : > { %v1238_v12 = vpop.f32.mrb[0].mxu0 }
 0x17e   : > { %v866_v59 = vadd.f32 %v1238_v12, %v1767_v11  ;;  %v857_v13 = vpop.f32.mrb[1].mxu0 }
 0x17f   : > { %v858_v60 = vadd.f32 %v1767_v11, %v857_v13  ;;  %v1239_v14 = vpop.f32.mrb[2].mxu0 }
 0x180   : > { %922 = vst.msk [vmem:[%s1772_s6 + $0x10] sm:$0xff] %vm690_vm6, %v866_v59  ;;  %v869_v15 = vadd.f32 %v1239_v14, %v1767_v11  ;;  %v860_v16 = vpop.f32.mrb[3].mxu0  ;;  %v975_v19 = vmul.f32 %v866_v59, %v866_v59  ;;  %v939_v24 = vsel %vm690_vm6, %v866_v59, 0.0 }
 0x181   : > { %920 = vst.msk [vmem:[%s1772_s6] sm:$0xff] %vm690_vm6, %v858_v60  ;;  %v973_v17 = vmul.f32 %v858_v60, %v858_v60  ;;  %v861_v18 = vadd.f32 %v1767_v11, %v860_v16  ;;  %v936_v20 = vsel %vm690_vm6, %v858_v60, 0.0 }
 0x182   : > { %923 = vst.msk [vmem:[%s1772_s6 + $0x18] sm:$0xff] %vm690_vm6, %v869_v15  ;;  %v976_v1 = vmul.f32 %v869_v15, %v869_v15  ;;  %v992_v29 = vsel %vm690_vm6, %v975_v19, 0.0  ;;  %v941_v30 = vsel %vm690_vm6, %v869_v15, 0.0 }
 0x183   : > { %921 = vst.msk [vmem:[%s1772_s6 + $0x8] sm:$0xff] %vm690_vm6, %v861_v18  ;;  %v937_v21 = vsel %vm690_vm6, %v861_v18, 0.0  ;;  %v974_v23 = vmul.f32 %v861_v18, %v861_v18  ;;  %v989_v25 = vsel %vm690_vm6, %v973_v17, 0.0 }
 0x184   : > { %v938_v3 = vadd.f32 %v937_v21, %v936_v20  ;;  %v994_v34 = vsel %vm690_vm6, %v976_v1, 0.0 }
 0x185   : > { %v990_v26 = vsel %vm690_vm6, %v974_v23, 0.0 }
 0x186   : > { %v940_v27 = vadd.f32 %v939_v24, %v938_v3  ;;  %v991_v28 = vadd.f32 %v990_v26, %v989_v25 }
 0x188   : > { %v993_v33 = vadd.f32 %v992_v29, %v991_v28  ;;  %v942_v31 = vadd.f32 %v941_v30, %v940_v27 }
 0x18a   : > { %v995_v36 = vadd.f32 %v994_v34, %v993_v33 }
 0x19d   : > { %v1242_v37 = vpop.f32.mrb[4].mxu0 }
 0x19e   : > { %v882_v39 = vadd.f32 %v1242_v37, %v1767_v11  ;;  %v873_v50 = vpop.f32.mrb[5].mxu0 }
 0x19f   : > { %v874_v40 = vadd.f32 %v1767_v11, %v873_v50  ;;  %v1243_v41 = vpop.f32.mrb[6].mxu0 }
 0x1a0   : > { %926 = vst.msk [vmem:[%s1772_s6 + $0x30] sm:$0xff] %vm690_vm6, %v882_v39  ;;  %v885_v45 = vadd.f32 %v1243_v41, %v1767_v11  ;;  %v876_v46 = vpop.f32.mrb[7].mxu0  ;;  %v979_v43 = vmul.f32 %v882_v39, %v882_v39  ;;  %v947_v55 = vsel %vm690_vm6, %v882_v39, 0.0 }
 0x1a1   : > { %924 = vst.msk [vmem:[%s1772_s6 + $0x20] sm:$0xff] %vm690_vm6, %v874_v40  ;;  %v943_v47 = vsel %vm690_vm6, %v874_v40, 0.0  ;;  %v977_v48 = vmul.f32 %v874_v40, %v874_v40  ;;  %v877_v32 = vadd.f32 %v1767_v11, %v876_v46 }
 0x1a2   : > { %v944_v42 = vadd.f32 %v943_v47, %v942_v31  ;;  %927 = vst.msk [vmem:[%s1772_s6 + $0x38] sm:$0xff] %vm690_vm6, %v885_v45  ;;  %v980_v35 = vmul.f32 %v885_v45, %v885_v45  ;;  %v1000_v62 = vsel %vm690_vm6, %v979_v43, 0.0  ;;  %v949_v63 = vsel %vm690_vm6, %v885_v45, 0.0 }
 0x1a3   : > { %v996_v44 = vsel %vm690_vm6, %v977_v48, 0.0  ;;  %925 = vst.msk [vmem:[%s1772_s6 + $0x28] sm:$0xff] %vm690_vm6, %v877_v32  ;;  %v945_v49 = vsel %vm690_vm6, %v877_v32, 0.0  ;;  %v978_v51 = vmul.f32 %v877_v32, %v877_v32 }
 0x1a4   : > { %v997_v52 = vadd.f32 %v996_v44, %v995_v36  ;;  %v946_v54 = vadd.f32 %v945_v49, %v944_v42  ;;  %v1002_v0 = vsel %vm690_vm6, %v980_v35, 0.0 }
 0x1a5   : > { %v998_v56 = vsel %vm690_vm6, %v978_v51, 0.0 }
 0x1a6   : > { %v948_v58 = vadd.f32 %v947_v55, %v946_v54  ;;  %v999_v61 = vadd.f32 %v998_v56, %v997_v52 }
 0x1a8   : > { %v1001_v2 = vadd.f32 %v1000_v62, %v999_v61  ;;  %v950_v4 = vadd.f32 %v949_v63, %v948_v58 }
 0x1aa   : > { %v1003_v38 = vadd.f32 %v1002_v0, %v1001_v2 }
 0x1bd   : > { %v1246_v53 = vpop.f32.mrb[0].mxu1 }
 0x1be   : > { %v898_v5 = vadd.f32 %v1246_v53, %v1767_v11  ;;  %v889_v6 = vpop.f32.mrb[1].mxu1 }
 0x1bf   : > { %v890_v7 = vadd.f32 %v1767_v11, %v889_v6  ;;  %v1247_v57 = vpop.f32.mrb[2].mxu1 }
 0x1c0   : > { %930 = vst.msk [vmem:[%s1772_s6 + $0x50] sm:$0xff] %vm690_vm6, %v898_v5  ;;  %v901_v8 = vadd.f32 %v1247_v57, %v1767_v11  ;;  %v892_v22 = vpop.f32.mrb[3].mxu1  ;;  %v983_v13 = vmul.f32 %v898_v5, %v898_v5  ;;  %v955_v18 = vsel %vm690_vm6, %v898_v5, 0.0 }
 0x1c1   : > { %928 = vst.msk [vmem:[%s1772_s6 + $0x40] sm:$0xff] %vm690_vm6, %v890_v7  ;;  %v951_v9 = vsel %vm690_vm6, %v890_v7, 0.0  ;;  %v981_v10 = vmul.f32 %v890_v7, %v890_v7  ;;  %v893_v12 = vadd.f32 %v1767_v11, %v892_v22 }
 0x1c2   : > { %v952_v59 = vadd.f32 %v951_v9, %v950_v4  ;;  %931 = vst.msk [vmem:[%s1772_s6 + $0x58] sm:$0xff] %vm690_vm6, %v901_v8  ;;  %v984_v19 = vmul.f32 %v901_v8, %v901_v8  ;;  %v1008_v3 = vsel %vm690_vm6, %v983_v13, 0.0  ;;  %v957_v24 = vsel %vm690_vm6, %v901_v8, 0.0 }
 0x1c3   : > { %v1004_v60 = vsel %vm690_vm6, %v981_v10, 0.0  ;;  %929 = vst.msk [vmem:[%s1772_s6 + $0x48] sm:$0xff] %vm690_vm6, %v893_v12  ;;  %v953_v14 = vsel %vm690_vm6, %v893_v12, 0.0  ;;  %v982_v15 = vmul.f32 %v893_v12, %v893_v12 }
 0x1c4   : > { %v1005_v16 = vadd.f32 %v1004_v60, %v1003_v38  ;;  %v954_v17 = vadd.f32 %v953_v14, %v952_v59  ;;  %v1010_v26 = vsel %vm690_vm6, %v984_v19, 0.0 }
 0x1c5   : > { %v1006_v20 = vsel %vm690_vm6, %v982_v15, 0.0 }
 0x1c6   : > { %v956_v21 = vadd.f32 %v955_v18, %v954_v17  ;;  %v1007_v23 = vadd.f32 %v1006_v20, %v1005_v16 }
 0x1c8   : > { %v1009_v25 = vadd.f32 %v1008_v3, %v1007_v23  ;;  %v958_v1 = vadd.f32 %v957_v24, %v956_v21 }
 0x1ca   : > { %v1011_v27 = vadd.f32 %v1010_v26, %v1009_v25 }
 0x1da   : > { %v1250_v28 = vpop.f32.mrb[4].mxu1 }
 0x1db   : > { %v914_v29 = vadd.f32 %v1250_v28, %v1767_v11  ;;  %v905_v30 = vpop.f32.mrb[5].mxu1 }
 0x1dc   : > { %v906_v33 = vadd.f32 %v1767_v11, %v905_v30  ;;  %v1251_v31 = vpop.f32.mrb[6].mxu1 }
 0x1dd   : > { %934 = vst.msk [vmem:[%s1772_s6 + $0x70] sm:$0xff] %vm690_vm6, %v914_v29  ;;  %v917_v34 = vadd.f32 %v1251_v31, %v1767_v11  ;;  %v908_v36 = vpop.f32.mrb[7].mxu1  ;;  %v987_v41 = vmul.f32 %v914_v29, %v914_v29  ;;  %v963_v42 = vsel %vm690_vm6, %v914_v29, 0.0 }
 0x1de   : > { %932 = vst.msk [vmem:[%s1772_s6 + $0x60] sm:$0xff] %vm690_vm6, %v906_v33  ;;  %v959_v37 = vsel %vm690_vm6, %v906_v33, 0.0  ;;  %v985_v39 = vmul.f32 %v906_v33, %v906_v33  ;;  %v909_v50 = vadd.f32 %v1767_v11, %v908_v36 }
 0x1df   : > { %v960_v40 = vadd.f32 %v959_v37, %v958_v1  ;;  %935 = vst.msk [vmem:[%s1772_s6 + $0x78] sm:$0xff] %vm690_vm6, %v917_v34  ;;  %v988_v43 = vmul.f32 %v917_v34, %v917_v34  ;;  %v1016_v51 = vsel %vm690_vm6, %v987_v41, 0.0  ;;  %v965_v52 = vsel %vm690_vm6, %v917_v34, 0.0 }
 0x1e0   : > { %v1012_v45 = vsel %vm690_vm6, %v985_v39, 0.0  ;;  %933 = vst.msk [vmem:[%s1772_s6 + $0x68] sm:$0xff] %vm690_vm6, %v909_v50  ;;  %v961_v46 = vsel %vm690_vm6, %v909_v50, 0.0  ;;  %v986_v47 = vmul.f32 %v909_v50, %v909_v50 }
 0x1e1   : > { %v1013_v48 = vadd.f32 %v1012_v45, %v1011_v27  ;;  %v962_v32 = vadd.f32 %v961_v46, %v960_v40  ;;  %v1018_v35 = vsel %vm690_vm6, %v988_v43, 0.0 }
 0x1e2   : > { %v1014_v11 = vsel %vm690_vm6, %v986_v47, 0.0 }
 0x1e3   : > { %v964_v44 = vadd.f32 %v963_v42, %v962_v32  ;;  %v1015_v49 = vadd.f32 %v1014_v11, %v1013_v48 }
 0x1e5   : > { %v966_v54 = vadd.f32 %v965_v52, %v964_v44  ;;  %v1017_v55 = vadd.f32 %v1016_v51, %v1015_v49 }
 0x1e7   : > { %v967_v56 = vrot.slane %v966_v54, 4  ;;  %v1019_v58 = vadd.f32 %v1018_v35, %v1017_v55 }
 0x1e9   : > { %v968_v61 = vadd.f32 %v967_v56, %v966_v54  ;;  %v1020_v62 = vrot.slane %v1019_v58, 4 }
 0x1eb   : > { %v969_v63 = vrot.slane %v968_v61, 2  ;;  %v1021_v2 = vadd.f32 %v1020_v62, %v1019_v58 }
 0x1ed   : > { %v970_v4 = vadd.f32 %v969_v63, %v968_v61  ;;  %v1022_v0 = vrot.slane %v1021_v2, 2 }
 0x1ef   : > { %v971_v38 = vrot.slane %v970_v4, 1  ;;  %v1023_v53 = vadd.f32 %v1022_v0, %v1021_v2 }
 0x1f1   : > { %v1024_v5 = vrot.slane %v1023_v53, 1  ;;  %v972_v6 = vadd.f32 %v971_v38, %v970_v4 }
 0x1f3   : > { %v1025_v7 = vadd.f32 %v1024_v5, %v1023_v53 }
 0x1f5   : > { %v1027_v57 = vsel %vm1026_vm12, %v972_v6, %v1025_v7 }
 0x1f6   : > { %1029 = vst.msk [vmem:[%s243_s12] sm:$0x3] %vm1028_vm13, %v1027_v57 }
 0x1f7 PF: > { %s15_s19 = sadd.s32 1, %s1370_s19   ;;  %s1880_s15 = smov %s1362_s17 }
 0x1f8   : > { %p12_p8 = scmp.ge.s32.totalorder %s15_s19, 6   ;;  %s1881_s16 = smov %s1366_s18 }
 0x1f9   : > { %s1882_s17 = smov %s1885_s20  ;;  %s1883_s18 = smov %s1889_s21 }
 0x1fa   :  { %14 = sbr.rel (!%p12_p8) target bundleno = 3 (0x3), region = 75 }

</bundles_post_ra>
